<compile_context>
chip_gen: v7x
topology: tpu7x:2x2x1
jax: 0.10.0
libtpu: 0.0.40
codegen_flags: <defaults>
</compile_context>

<pallas_src>
import functools

import jax
import jax.numpy as jnp
from jax.experimental import pallas as pl
from jax.experimental.pallas import tpu as pltpu


def _ceil_to(x, m):
    return (x + m - 1) // m * m


def _pick_tile(total, candidates):
    for c in candidates:
        if c <= total and total % c == 0:
            return c
    return total


def _tpu_vmem_bytes():
    """Per-core VMEM capacity; conservative 64 MiB (v7x) fallback."""
    try:
        info = pltpu.get_tpu_info()
        for attr in ("vmem_capacity_bytes", "vmem_bytes", "vmem_size_bytes"):
            v = getattr(info, attr, None)
            if v:
                return int(v)
    except Exception:
        pass
    return 64 << 20


def prepare_adjacency(adj, *, use_bf16=True, align=256):
    """Pad + (optionally) downcast the dense adjacency ONCE; reuse every step."""
    N, K = adj.shape
    Np, Kp = _ceil_to(N, align), _ceil_to(K, align)
    if (Np, Kp) != (N, K):
        adj = jnp.pad(adj, ((0, Np - N), (0, Kp - K)))
    if use_bf16:
        adj = adj.astype(jnp.bfloat16)
    return adj, (N, K)


def _make_kernel(alpha, resident_h, tk):
    def kernel(adj_ref, h_ref, h0_ref, o_ref, *scratch):
        acc = scratch[0] if scratch else o_ref
        k = pl.program_id(2)

        if resident_h:
            start = pl.multiple_of(k * tk, 128)
            h_tile = h_ref[pl.ds(start, tk), :]
        else:
            h_tile = h_ref[...]

        part = jnp.dot(adj_ref[...], h_tile, preferred_element_type=jnp.float32)

        @pl.when(k == 0)
        def _():
            acc[...] = part            # first partial: plain store (no zero-init pass)

        @pl.when(k > 0)
        def _():
            acc[...] += part

        @pl.when(k == pl.num_programs(2) - 1)
        def _():
            blended = (1.0 - alpha) * acc[...] + alpha * h0_ref[...].astype(jnp.float32)
            o_ref[...] = blended.astype(o_ref.dtype)

    return kernel


def appnp_conv(adj, h, h0, *, alpha, use_bf16=True, prepared_adj=None):
    """Dense APPNP propagation: (1 - alpha) * adj @ h + alpha * h0."""
    if prepared_adj is not None:
        adj_p, (N, K) = prepared_adj
    else:
        adj_p, (N, K) = prepare_adjacency(adj, use_bf16=use_bf16)
    Np, Kp = adj_p.shape

    K2, D = h.shape
    assert K == K2 and h0.shape == (N, D), "shape mismatch"

    out_dtype = h.dtype
    use_scratch = out_dtype != jnp.float32

    # Pad the (cheap, N*D-sized) per-step tensors; padding is sliced off at the end.
    Dp = _ceil_to(D, 128)
    if (Kp, Dp) != (K, D):
        h = jnp.pad(h, ((0, Kp - K), (0, Dp - D)))
    if (Np, Dp) != (N, D):
        h0 = jnp.pad(h0, ((0, Np - N), (0, Dp - D)))
    if use_bf16:
        h = h.astype(jnp.bfloat16)

    adj_b = adj_p.dtype.itemsize
    h_b = h.dtype.itemsize
    h0_b = h0.dtype.itemsize
    out_b = jnp.dtype(out_dtype).itemsize

    # --- generation-aware VMEM budget ---------------------------------------
    vmem_bytes = _tpu_vmem_bytes()
    # ~24 MiB on v7x (64 MiB VMEM), ~56 MiB on v5e/v6e (128 MiB VMEM).
    budget = max(min((vmem_bytes >> 1) - (8 << 20), 56 << 20), 16 << 20)

    # --- tile selection (mem-bound on adj: stream it from HBM exactly once) --
    tn = Dp                                   # single j block = top priority
    tm = _pick_tile(Np, (1024, 512, 256))
    tk = _pick_tile(Kp, (2048, 1024, 512, 256))
    resident_h = True                         # hold all of h in VMEM if it fits

    def footprint(tm_, tk_, tn_, res):
        f = 2 * tm_ * tk_ * adj_b + 2 * tm_ * tn_ * (h0_b + out_b)
        f += 2 * (Kp if res else tk_) * tn_ * h_b
        if use_scratch:
            f += tm_ * tn_ * 4
        return f

    # Shrink order: tk -> tm (>=256) -> drop h residency -> tm (>=128)
    # -> split tn only as a last resort (re-streams adj once per j block).
    while footprint(tm, tk, tn, resident_h) > budget and tk > 128:
        tk //= 2
    while footprint(tm, tk, tn, resident_h) > budget and tm > 256:
        tm //= 2
    if footprint(tm, tk, tn, resident_h) > budget:
        resident_h = False
    while footprint(tm, tk, tn, resident_h) > budget and tm > 128:
        tm //= 2
    if footprint(tm, tk, tn, resident_h) > budget:
        for cand in range(Dp, 127, -128):
            if Dp % cand == 0:
                tn = cand
                if footprint(tm, tk, tn, resident_h) <= budget:
                    break

    # v7x has 2 TensorCores per chip: keep >=2 parallel blocks so the
    # "parallel" axes can shard across them. Skip on v5e/v6e (single TC).
    if (vmem_bytes <= (64 << 20) and Np // tm == 1 and Dp // tn == 1
            and tm % 256 == 0):
        tm //= 2

    fp = footprint(tm, tk, tn, resident_h)
    vmem_limit = int(min(max(fp + (8 << 20), 32 << 20), vmem_bytes - (12 << 20)))

    grid = (Np // tm, Dp // tn, Kp // tk)

    if resident_h:
        # Constant block index over i and k -> h is DMA'd from HBM exactly once
        # per j block (once total when tn == Dp); sliced with pl.ds in-kernel.
        h_spec = pl.BlockSpec((Kp, tn), lambda i, j, k: (0, j))
    else:
        h_spec = pl.BlockSpec((tk, tn), lambda i, j, k: (k, j))

    in_specs = [
        pl.BlockSpec((tm, tk), lambda i, j, k: (i, k)),   # adj: streamed once per j
        h_spec,
        pl.BlockSpec((tm, tn), lambda i, j, k: (i, j)),   # h0: resident over k
    ]
    out_spec = pl.BlockSpec((tm, tn), lambda i, j, k: (i, j))

    scratch_shapes = [pltpu.VMEM((tm, tn), jnp.float32)] if use_scratch else []
    kernel = _make_kernel(float(alpha), resident_h, tk)

    out = pl.pallas_call(
        kernel,
        out_shape=jax.ShapeDtypeStruct((Np, Dp), out_dtype),
        grid_spec=pltpu.PrefetchScalarGridSpec(
            num_scalar_prefetch=0,
            grid=grid,
            in_specs=in_specs,
            out_specs=out_spec,
            scratch_shapes=scratch_shapes,
        ),
        compiler_params=pltpu.CompilerParams(
            dimension_semantics=("parallel", "parallel", "arbitrary"),
            vmem_limit_bytes=vmem_limit,
        ),
    )(adj_p, h, h0)

    if (Np, Dp) != (N, D):
        out = out[:N, :D]
    return out


class APPNP_Conv:
    """JAX mirror of the PyTorch APPNP_Conv module (no learnable params)."""

    def __init__(self, input_dim, output_dim, *args, **kwargs):
        self.input_dim = input_dim
        self.output_dim = output_dim
        self.alpha = kwargs["alpha"]
        if "layer_id" in kwargs:
            self.layer_id = kwargs["layer_id"]
        self.use_bf16 = kwargs.get("use_bf16", True)
        self._adj_src = None
        self._adj_prepared = None

    def __call__(self, adj, h, h0):
        # adj is identical across APPNP's K propagation steps: pad + downcast
        # it once and reuse the cached copy (saves 1-2 extra HBM passes over
        # the N^2 adjacency per step).
        if self._adj_prepared is None or self._adj_src is not adj:
            self._adj_prepared = prepare_adjacency(adj, use_bf16=self.use_bf16)
            self._adj_src = adj
        return appnp_conv(None, h, h0, alpha=self.alpha,
                          use_bf16=self.use_bf16,
                          prepared_adj=self._adj_prepared)


if __name__ == "__main__":
    alpha = 0.1
    key = jax.random.PRNGKey(0)

    def make_inputs(key, n, d):
        k_adj, k_h, k_h0 = jax.random.split(key, 3)
        adj_raw = jax.random.uniform(k_adj, (n, n), dtype=jnp.float32)
        adj = adj_raw / jnp.sum(adj_raw, axis=1, keepdims=True)  # row-stochastic
        h = jax.random.normal(k_h, (n, d), dtype=jnp.float32)
        h0 = jax.random.normal(k_h0, (n, d), dtype=jnp.float32)
        return adj, h, h0

    # --- case 1: aligned shapes + cached-adjacency reuse across two steps ---
    N, D = 256, 128
    adj, h, h0 = make_inputs(key, N, D)
    layer = APPNP_Conv(D, D, alpha=alpha, layer_id=0)
    out1 = jax.block_until_ready(layer(adj, h, h0))      # prepares + caches adj
    out2 = jax.block_until_ready(layer(adj, out1, h0))   # reuses cached adj

    ref1 = (1.0 - alpha) * (adj @ h) + alpha * h0
    ref2 = (1.0 - alpha) * (adj @ ref1) + alpha * h0
    assert out1.shape == (N, D) and out1.dtype == jnp.float32
    assert jnp.allclose(out1, ref1, atol=2e-2, rtol=2e-2)
    assert jnp.allclose(out2, ref2, atol=2e-2, rtol=2e-2)

    # --- case 2: ragged shapes (exercises padding) via functional entry -----
    key2 = jax.random.PRNGKey(1)
    N2, D2 = 200, 96
    adj2, h2, h02 = make_inputs(key2, N2, D2)
    out3 = jax.block_until_ready(appnp_conv(adj2, h2, h02, alpha=alpha))
    ref3 = (1.0 - alpha) * (adj2 @ h2) + alpha * h02
    assert out3.shape == (N2, D2)
    assert jnp.allclose(out3, ref3, atol=2e-2, rtol=2e-2)

    print("KERNEL_OK")
</pallas_src>

<mosaic_0001>
module attributes {stable_mosaic.version = 11 : i64} {
  func.func @kernel(%arg0: i32, %arg1: i32, %arg2: i32, %arg3: memref<128x256xbf16, #tpu.memory_space<vmem>>, %arg4: memref<256x128xbf16, #tpu.memory_space<vmem>>, %arg5: memref<128x128xf32, #tpu.memory_space<vmem>>, %arg6: memref<128x128xf32, #tpu.memory_space<vmem>>) attributes {dimension_semantics = [#tpu.dimension_semantics<parallel>, #tpu.dimension_semantics<parallel>, #tpu.dimension_semantics<arbitrary>], iteration_bounds = array<i64: 2, 1, 1>, scalar_prefetch = 0 : i64, scratch_operands = 0 : i64, tpu.core_type = #tpu.core_type<tc>, window_params = [{transform_indices = @transform_0, window_bounds = array<i64: 128, 256>}, {transform_indices = @transform_1, window_bounds = array<i64: 256, 128>}, {transform_indices = @transform_2, window_bounds = array<i64: 128, 128>}, {transform_indices = @transform_3, window_bounds = array<i64: 128, 128>}]} {
    %c256_i32 = arith.constant 256 : i32
    %0 = arith.muli %arg2, %c256_i32 : i32
    %1 = tpu.assume_multiple %0, 128 : i32
    %2 = arith.index_cast %1 : i32 to index
    %c0 = arith.constant 0 : index
    %3 = vector.load %arg4[%2, %c0] : memref<256x128xbf16, #tpu.memory_space<vmem>>, vector<256x128xbf16>
    %c0_0 = arith.constant 0 : index
    %c0_1 = arith.constant 0 : index
    %4 = vector.load %arg3[%c0_0, %c0_1] : memref<128x256xbf16, #tpu.memory_space<vmem>>, vector<128x256xbf16>
    %cst = arith.constant dense<0.000000e+00> : vector<128x128xf32>
    %5 = tpu.matmul %4, %3, %cst {dimension_numbers = #tpu.dot_dimension_numbers<[1], [0], [0], [1], [0, 0, 1, 1], [], []>} : vector<128x256xbf16>, vector<256x128xbf16>, vector<128x128xf32> -> vector<128x128xf32>
    %c0_i32 = arith.constant 0 : i32
    %6 = arith.cmpi eq, %arg2, %c0_i32 : i32
    %7 = arith.extui %6 : i1 to i32
    %c0_i32_2 = arith.constant 0 : i32
    %8 = arith.cmpi ne, %7, %c0_i32_2 : i32
    scf.if %8 {
      %c0_7 = arith.constant 0 : index
      %c0_8 = arith.constant 0 : index
      %15 = vector.load %arg6[%c0_7, %c0_8] : memref<128x128xf32, #tpu.memory_space<vmem>>, vector<128x128xf32>
      tpu.vector_store %arg6[%c0_7, %c0_8], %5 {strides = array<i32>} : memref<128x128xf32, #tpu.memory_space<vmem>>, vector<128x128xf32>,
    } else {
    }
    %c0_i32_3 = arith.constant 0 : i32
    %9 = arith.cmpi sgt, %arg2, %c0_i32_3 : i32
    %10 = arith.extui %9 : i1 to i32
    %c0_i32_4 = arith.constant 0 : i32
    %11 = arith.cmpi ne, %10, %c0_i32_4 : i32
    scf.if %11 {
      %c0_7 = arith.constant 0 : index
      %c0_8 = arith.constant 0 : index
      %15 = vector.load %arg6[%c0_7, %c0_8] : memref<128x128xf32, #tpu.memory_space<vmem>>, vector<128x128xf32>
      %16 = arith.addf %15, %5 : vector<128x128xf32>
      %c0_9 = arith.constant 0 : index
      %c0_10 = arith.constant 0 : index
      %17 = vector.load %arg6[%c0_9, %c0_10] : memref<128x128xf32, #tpu.memory_space<vmem>>, vector<128x128xf32>
      tpu.vector_store %arg6[%c0_9, %c0_10], %16 {strides = array<i32>} : memref<128x128xf32, #tpu.memory_space<vmem>>, vector<128x128xf32>,
    } else {
    }
    %c0_i32_5 = arith.constant 0 : i32
    %12 = arith.cmpi eq, %arg2, %c0_i32_5 : i32
    %13 = arith.extui %12 : i1 to i32
    %c0_i32_6 = arith.constant 0 : i32
    %14 = arith.cmpi ne, %13, %c0_i32_6 : i32
    scf.if %14 {
      %c0_7 = arith.constant 0 : index
      %c0_8 = arith.constant 0 : index
      %15 = vector.load %arg6[%c0_7, %c0_8] : memref<128x128xf32, #tpu.memory_space<vmem>>, vector<128x128xf32>
      %cst_9 = arith.constant 0.899999976 : f32
      %16 = vector.broadcast %cst_9 : f32 to vector<128x128xf32>
      %17 = arith.mulf %16, %15 : vector<128x128xf32>
      %c0_10 = arith.constant 0 : index
      %c0_11 = arith.constant 0 : index
      %18 = vector.load %arg5[%c0_10, %c0_11] : memref<128x128xf32, #tpu.memory_space<vmem>>, vector<128x128xf32>
      %cst_12 = arith.constant 1.000000e-01 : f32
      %19 = vector.broadcast %cst_12 : f32 to vector<128x128xf32>
      %20 = arith.mulf %19, %18 : vector<128x128xf32>
      %21 = arith.addf %17, %20 : vector<128x128xf32>
      %c0_13 = arith.constant 0 : index
      %c0_14 = arith.constant 0 : index
      %22 = vector.load %arg6[%c0_13, %c0_14] : memref<128x128xf32, #tpu.memory_space<vmem>>, vector<128x128xf32>
      tpu.vector_store %arg6[%c0_13, %c0_14], %21 {strides = array<i32>} : memref<128x128xf32, #tpu.memory_space<vmem>>, vector<128x128xf32>,
    } else {
    }
    return
  }
  func.func @transform_0(%arg0: i32, %arg1: i32, %arg2: i32) -> (i32, i32) {
    %c0_i32 = arith.constant 0 : i32
    return %arg0, %arg2 : i32, i32
  }
  func.func @transform_1(%arg0: i32, %arg1: i32, %arg2: i32) -> (i32, i32) {
    %c0_i32 = arith.constant 0 : i32
    %c0_i32_0 = arith.constant 0 : i32
    return %c0_i32, %arg1 : i32, i32
  }
  func.func @transform_2(%arg0: i32, %arg1: i32, %arg2: i32) -> (i32, i32) {
    %c0_i32 = arith.constant 0 : i32
    return %arg0, %arg1 : i32, i32
  }
  func.func @transform_3(%arg0: i32, %arg1: i32, %arg2: i32) -> (i32, i32) {
    %c0_i32 = arith.constant 0 : i32
    return %arg0, %arg1 : i32, i32
  }
}

</mosaic_0001>

<bundles_post_ra>
// kernel: tpu_custom_call.1
= control target key start
LH: loop header
LB: loop body
LE: loop exit
PB: predicated region body
PF: predicated region fallthrough
CT: control target
= control target key end

     0   :  { %8 = vsyncpa [#allocation3], 0  ;;  %s1725_s0 = inlined_call_operand.hbm [shape: bf16[256,256], index: 0, kind: input, shape index: {}]   ;;  %s1726_s1 = inlined_call_operand.hbm [shape: bf16[256,128], index: 1, kind: input, shape index: {}]   ;;  %s1727_s2 = inlined_call_operand.hbm [shape: f32[256,128], index: 2, kind: input, shape index: {}]   ;;  %s1728_s3 = inlined_call_operand.hbm [shape: f32[256,128], index: 3, kind: output, shape index: {}]  }
   0x1   :  { %10 = vsyncpa [#allocation3 + $0x1], 0 }
   0x2   :  { %11 = vsyncpa [#allocation6], 0 }
   0x3   :  { %12 = vsyncpa [#allocation4], 0 }
   0x4   :  { %14 = vsyncpa [#allocation4 + $0x1], 0  ;;  %s1391_s12 = smov 0   ;;  %s1393_s13 = smov 0  }
   0x5   :  { %s1395_s14 = smov 0   ;;  %s1397_s15 = smov 0  }
   0x6   :  { %s1399_s16 = smov 0   ;;  %s1401_s17 = smov 0  }
   0x7 LB: > { %s39_s18 = sadd.s32 1, %s1355_s16  ;;  %s48_s19 = sadd.s32 1, %s1347_s14  ;;  %s1359_s17 = sphi %s1401_s17, %s20_s17   ;;  %s1355_s16 = sphi %s1399_s16, %s1752_s16   ;;  %s1351_s15 = sphi %s1397_s15, %s1751_s15   ;;  %s1347_s14 = sphi %s1395_s14, %s1750_s14   ;;  %s1343_s13 = sphi %s1393_s13, %s1749_s13   ;;  %s1339_s12 = sphi %s1391_s12, %s1748_s12  }
   0x8   : > { %p41_p0 = scmp.ge.s32.totalorder %s39_s18, 2  ;;  %p55_p1 = scmp.ne.s32.totalorder %s1347_s14, %s1343_s13 }
   0x9   : > { %p56_p2 = scmp.eq.s32.totalorder %s1359_s17, 0  ;;  %p1083_p5 = scmp.lt.s32.totalorder %s1359_s17, 2 }
   0xa   : > { %s1754_s18 = smov (%p41_p0, %s39_s18), 0  ;;  %s182_s21 = sand.u32 1, %s1359_s17  }
   0xb   : > { %p57_p4 = por %p56_p2, %p55_p1  ;;  %s43_s20 = ssub.s32 %s1355_s16, %s1754_s18 }
   0xc   : > { %p46_p6 = scmp.eq.s32.totalorder %s43_s20, 0  ;;  %s184_s22 = sand.u32 1, %s1347_s14  }
   0xd   : > { %s974_s23 = sshll.u32 %s1355_s16, 11  ;;  %s1441_s25 = sshll.u32 %s184_s22, 7 }
   0xe   : > { %s1439_s24 = scalar_select %p46_p6, %s1347_s14, %s48_s19  }
   0xf   : > { %s1448_s28 = scalar_lea.hbm %s1725_s0, %s974_s23  ;;  %p1450_p7 = pnand %p1083_p5, %p57_p4 }
  0x10   : > { %s186_s30 = scalar_lea.vmem [#allocation2], %s1441_s25  ;;  %s1457_s5 = scalar_lea.sflag [#allocation3], %s182_s21 }
  0x11   : > { %s196_s4 = sshll.u32 %s186_s30, 4  ;;  %s1181_s6 = scalar_lea.hbm %s1448_s28, 2048  ;;  %s1455_s4 = int_to_ptr.vmem [resolvable:$true] %s196_s4 }
  0x12   : > { %p1182_p8 = scmp.ne.s32.totalorder %s1448_s28, %s1181_s6  ;;  %p1183_p9 = pneg %p1450_p7 }
  0x13   : > { %s1186_s9 = scalar_lea.hbm %s1725_s0, 4096  ;;  %p1187_p12 = scmp.lt.u32.totalorder %s1448_s28, %s1725_s0 }
  0x14   : > { %p1184_p10 = pnand %p1183_p9, %p1182_p8  ;;  %p1188_p13 = scmp.lt.u32.totalorder %s1186_s9, %s1181_s6 }
  0x15   : > { %p1190_p2 = scmp.lt.u32.totalorder %s1181_s6, %s1448_s28 }
  0x16   : > { %p1185_p11 = pneg %p1184_p10  ;;  %p1189_p0 = por %p1188_p13, %p1187_p12 }
  0x18   : > { %p1191_p4 = por %p1190_p2, %p1189_p0 }
  0x1a   : > { %p1192_p5 = pnand %p1191_p4, %p1185_p11 }
  0x1c   : > { %1195 = shalt.err (!%p1192_p5)
}
  0x1d   : > { %s1196_s19 = scalar_lea.vmem %s1455_s4, 2048  ;;  %s1361_s20 = smov [#allocation2]  }
  0x1e   : > { %p1197_p6 = scmp.ne.s32.totalorder %s1455_s4, %s1196_s19  ;;  %s1201_s21 = sshll.u32 %s1361_s20, 4  ;;  %s1202_s21 = int_to_ptr.vmem [resolvable:$false] %s1201_s21 }
  0x1f   : > { %s1203_s22 = scalar_lea.vmem %s1202_s21, 4096  ;;  %p1204_p3 = scmp.lt.s32.totalorder %s1455_s4, %s1202_s21 }
  0x20   : > { %p1199_p8 = pnand %p1197_p6, %p1183_p9  ;;  %p1205_p12 = scmp.lt.s32.totalorder %s1203_s22, %s1196_s19 }
  0x22   : > { %p1200_p10 = pneg %p1199_p8  ;;  %p1206_p13 = por %p1205_p12, %p1204_p3 }
  0x24   : > { %p1207_p0 = pnand %p1206_p13, %p1200_p10 }
  0x26   : > { %1210 = shalt.err (!%p1207_p0)
}
  0x27   : > { %s1362_s26 = smov 128   ;;  %s1363_s27 = smov 8  }
  0x28   : > { %1074 = dma.hbm_to_vmem [thread:$0]  (!%p1450_p7), %s1448_s28, 2048, %s1455_s4, %s1457_s5, %s1362_s26, %s1362_s26, %s1363_s27  }
  0x29   : > { %s1493_s7 = scalar_lea.hbm %s1727_s2, %s974_s23  ;;  %s210_s8 = scalar_lea.vmem [#allocation7], %s1441_s25 }
  0x2a   : > { %s218_s9 = sshll.u32 %s210_s8, 4  ;;  %s1499_s10 = sadd.s32 4294967295, %s1359_s17   ;;  %s1496_s9 = int_to_ptr.vmem [resolvable:$true] %s218_s9 }
  0x2b   : > { %s920_s11 = sadd.s32 4294967294, %s1359_s17   ;;  %p61_p3 = scmp.ne.s32.totalorder %s1343_s13, %s1339_s12 }
  0x2c   : > { %p1729_p11 = scmp.eq.s32.totalorder %s1499_s10, 0  ;;  %p141_p2 = scmp.eq.s32.totalorder %s1499_s10, 1 }
  0x2d   : > { %p147_p4 = scmp.eq.s32.totalorder %s920_s11, 1  ;;  %p921_p5 = scmp.ge.s32.totalorder %s1359_s17, 1 }
  0x2e   : > { %p1509_p6 = por %p1729_p11, %p61_p3  ;;  %p1516_p8 = por %p141_p2, %p55_p1 }
  0x2f   : > { %p1520_p10 = por %p147_p4, %p61_p3  ;;  %p154_p12 = scmp.lt.s32.totalorder %s1359_s17, 3 }
  0x30   : > { %s1734_s23 = scalar_select %p1509_p6, 1, 0 }
  0x31   : > { %s1735_s25 = scalar_select %p1516_p8, 1, 0 }
  0x32   : > { %s1736_s28 = scalar_select %p1520_p10, 1, 0 }
  0x33   : > { %p1525_p13 = pnand %p921_p5, %p154_p12  ;;  %s1364_s19 = smov [#allocation5]  }
  0x34   : > { %s168_s20 = sshll.u32 %s1364_s19, 4  ;;  %s1211_s21 = scalar_lea.hbm %s1493_s7, 2048  ;;  %s1529_s20 = int_to_ptr.vmem [resolvable:$true] %s168_s20 }
  0x35   : > { %s1737_s4 = scalar_select %p1525_p13, 1, 0 }
  0x36   : > { %p1212_p0 = scmp.ne.s32.totalorder %s1493_s7, %s1211_s21  ;;  %s1216_s6 = scalar_lea.hbm %s1727_s2, 4096 }
  0x37   : > { %p1217_p4 = scmp.lt.u32.totalorder %s1493_s7, %s1727_s2  ;;  %p1218_p5 = scmp.lt.u32.totalorder %s1216_s6, %s1211_s21 }
  0x38   : > { %p1214_p3 = pnand %p1212_p0, %p1183_p9  ;;  %p1220_p11 = scmp.lt.u32.totalorder %s1211_s21, %s1493_s7 }
  0x39   : > { %p1219_p12 = por %p1218_p5, %p1217_p4 }
  0x3a   : > { %p1215_p2 = pneg %p1214_p3 }
  0x3b   : > { %p1221_p10 = por %p1220_p11, %p1219_p12 }
  0x3d   : > { %p1222_p8 = pnand %p1221_p10, %p1215_p2 }
  0x3f   : > { %1225 = shalt.err (!%p1222_p8)
}
  0x40   : > { %s1226_s19 = scalar_lea.vmem %s1496_s9, 2048  ;;  %s1365_s22 = smov [#allocation7]  }
  0x41   : > { %p1227_p0 = scmp.ne.s32.totalorder %s1496_s9, %s1226_s19  ;;  %s1231_s30 = sshll.u32 %s1365_s22, 4  ;;  %s1232_s30 = int_to_ptr.vmem [resolvable:$false] %s1231_s30 }
  0x42   : > { %s1233_s8 = scalar_lea.vmem %s1232_s30, 4096  ;;  %p1234_p6 = scmp.lt.s32.totalorder %s1496_s9, %s1232_s30 }
  0x43   : > { %p1229_p3 = pnand %p1227_p0, %p1183_p9  ;;  %p1235_p4 = scmp.lt.s32.totalorder %s1233_s8, %s1226_s19 }
  0x45   : > { %p1230_p1 = pneg %p1229_p3  ;;  %p1236_p5 = por %p1235_p4, %p1234_p6 }
  0x47   : > { %p1237_p11 = pnand %p1236_p5, %p1230_p1 }
  0x49   : > { %1240 = shalt.err (!%p1237_p11)
}
  0x4a   : > { %1077 = dma.hbm_to_vmem [thread:$0]  (!%p1450_p7), %s1493_s7, 2048, %s1496_s9, %s1457_s5, %s1362_s26, %s1362_s26, %s1363_s27  }
  0x4b   : > { %p1738_p9 = scmp.eq.s32.totalorder %s1499_s10, 0  ;;  %p1739_p8 = pneg %p1525_p13 }
  0x4c   : > { %s1241_s29 = scalar_lea.hbm %s1726_s1, 2048 }
  0x4d   : > { %p1565_p10 = pnand %p1739_p8, %p1738_p9  ;;  %p1242_p6 = scmp.ne.s32.totalorder %s1726_s1, %s1241_s29 }
  0x4e   : > { %p1248_p12 = scmp.lt.u32.totalorder %s1241_s29, %s1726_s1 }
  0x4f   : > { %p1243_p1 = pneg %p1565_p10 }
  0x51   : > { %p1244_p2 = pnand %p1243_p1, %p1242_p6 }
  0x53   : > { %p1245_p7 = pneg %p1244_p2 }
  0x55   : > { %p1250_p0 = pnand %p1248_p12, %p1245_p7 }
  0x57   : > { %1253 = shalt.err (!%p1250_p0)
}
  0x58   : > { %s1254_s27 = scalar_lea.vmem %s1529_s20, 2048  ;;  %p1262_p11 = scmp.lt.s32.totalorder %s1529_s20, %s1529_s20 }
  0x59   : > { %p1255_p3 = scmp.ne.s32.totalorder %s1529_s20, %s1254_s27  ;;  %p1263_p9 = scmp.lt.s32.totalorder %s1254_s27, %s1254_s27 }
  0x5b   : > { %p1257_p4 = pnand %p1255_p3, %p1243_p1  ;;  %p1264_p8 = por %p1263_p9, %p1262_p11 }
  0x5d   : > { %p1258_p5 = pneg %p1257_p4 }
  0x5f   : > { %p1265_p13 = pnand %p1264_p8, %p1258_p5 }
  0x61   : > { %1268 = shalt.err (!%p1265_p13)
}
  0x62   : > { %s1366_s7 = smov 64   ;;  %s1367_s9 = smov 4  }
  0x63   : > { %1070 = dma.hbm_to_vmem [thread:$0]  (!%p1565_p10), %s1726_s1, 2048, %s1529_s20, [#allocation6], %s1366_s7, %s1366_s7, %s1367_s9  }
  0x64   : > { %p1741_p6 = scmp.ne.s32.totalorder %s1737_s4, 0 }
  0x65   : > { %s232_s6 = sand.u32 (!%p1741_p6), 1, %s1499_s10   ;;  %s234_s11 = sand.u32 (!%p1741_p6), 1, %s1343_s13  }
  0x66   : > { %230 = sbr.rel (%p1741_p6) target bundleno = 409 (0x199), region = 32  ;;  %s1596_s29 = sshll.u32 (!%p1741_p6), %s234_s11, 7 }
  0x67   : > { %s233_s19 = scalar_lea.sflag (!%p1741_p6), [#allocation3], %s232_s6  ;;  %s1599_s22 = scalar_lea.vmem (!%p1741_p6), [#allocation2], %s1596_s29 }
  0x68   : > { %p1742_p13 = scmp.ne.s32.totalorder (!%p1741_p6), %s1734_s23, 0 }
  0x6d   : > { %1322 = dma.done.wait (%p1742_p13), %s233_s19, 2048  }
  0x6e   : > { %1324 = vsyncadd (%p1742_p13), %s233_s19, 4294965248  ;;  %p1743_p10 = scmp.eq.s32.totalorder %s1499_s10, 0 }
  0x70   : > { %1326 = dma.done.wait (%p1743_p10), [#allocation6], 2048   ;;  %p1744_p1 = pmov %p1743_p10 }
  0x71   : > { %s1610_s4 = scalar_lea.vmem [#allocation7], %s1596_s29 }
  0x72   : > { %1328 = vsyncadd (%p1744_p1), [#allocation6], 4294965248 }
  0x73   : > { %1330 = dma.done.wait (%p1742_p13), %s233_s19, 2048  }
  0x74   : > { %1332 = vsyncadd (%p1742_p13), %s233_s19, 4294965248  ;;  %v1141_v0 = vld [vmem:[#allocation5 + $0x40] sm:$0xff]   ;;  %v1143_v2 = vld [vmem:[#allocation5 + $0x48] sm:$0xff]   ;;  %s1639_s10 = scalar_lea.vmem [#allocation8], %s1596_s29  ;;  %s976_s23 = sshll.u32 %s1351_s15, 11 }
  0x75   : > { %v1142_v1 = vld [vmem:[#allocation5] sm:$0xff]   ;;  %977 = vmatprep.subr.bf16.mxu0 %v1141_v0  ;;  %1041 = vmatprep.subr.bf16.mxu1 %v1141_v0  ;;  %v1144_v3 = vld [vmem:[#allocation5 + $0x8] sm:$0xff]   ;;  %v1145_v4 = vld [vmem:[#allocation5 + $0x50] sm:$0xff]   ;;  %s794_s20 = sshll.u32 %s1639_s10, 4  ;;  %s1668_s26 = scalar_lea.hbm %s1728_s3, %s976_s23  ;;  %s1670_s20 = int_to_ptr.vmem [resolvable:$true] %s794_s20 }
  0x76   : > { %978 = vmatpush3.bf16.msra.mxu0 %v1142_v1  ;;  %1049 = vmatpush3.bf16.msra.mxu1 %v1142_v1  ;;  %v1146_v5 = vld [vmem:[#allocation5 + $0x10] sm:$0xff]   ;;  %v1147_v6 = vld [vmem:[#allocation5 + $0x58] sm:$0xff]   ;;  %v1149_v8 = vld [vmem:[#allocation5 + $0x60] sm:$0xff]   ;;  %s1678_s15 = scalar_lea.sflag [#allocation4], %s234_s11  ;;  %s1269_s27 = scalar_lea.vmem %s1670_s20, 2048 }
  0x77   : > { %979 = vmatprep.subr.bf16.mxu0 %v1143_v2  ;;  %1042 = vmatprep.subr.bf16.mxu1 %v1143_v2  ;;  %v1148_v7 = vld [vmem:[#allocation5 + $0x18] sm:$0xff]   ;;  %v1150_v9 = vld [vmem:[#allocation5 + $0x20] sm:$0xff]   ;;  %v1151_v10 = vld [vmem:[#allocation5 + $0x68] sm:$0xff]   ;;  %p1270_p2 = scmp.ne.s32.totalorder %s1670_s20, %s1269_s27  ;;  %p1745_p7 = scmp.ne.s32.totalorder %s1735_s25, 0 }
  0x78   : > { %v1159_v11 = vld [vmem:[%s1599_s22 + $0x4] ss:$8 sps:$4 sm:$0xff]   ;;  %v1153_v14 = vld [vmem:[#allocation5 + $0x70] sm:$0xff]   ;;  %v1155_v16 = vld [vmem:[#allocation5 + $0x78] sm:$0xff]   ;;  %s1368_s7 = smov [#allocation8]  }
  0x79   : > { %v1162_v12 = vld [vmem:[%s1599_s22 + $0x44] ss:$8 sps:$4 sm:$0xff]   ;;  %543 = vmatprep.mubr.bf16.mxu0 %v1159_v11  ;;  %v1154_v15 = vld [vmem:[#allocation5 + $0x30] sm:$0xff]   ;;  %v1156_v17 = vld [vmem:[#allocation5 + $0x38] sm:$0xff]   ;;  %p1271_p12 = pnand %p1270_p2, %p1745_p7  ;;  %s1273_s9 = sshll.u32 %s1368_s7, 4  ;;  %s1274_s9 = int_to_ptr.vmem [resolvable:$false] %s1273_s9 }
  0x7a   : > { %980 = vmatpush3.bf16.msra.mxu0 %v1144_v3  ;;  %1050 = vmatpush3.bf16.msra.mxu1 %v1144_v3  ;;  %v1152_v13 = vld [vmem:[#allocation5 + $0x28] sm:$0xff]   ;;  %v1163_v20 = vld [vmem:[%s1599_s22 + $0x14] ss:$8 sps:$4 sm:$0xff]   ;;  %v1167_v22 = vld [vmem:[%s1599_s22 + $0x10] ss:$8 sps:$4 sm:$0xff]   ;;  %s1275_s30 = scalar_lea.vmem %s1274_s9, 4096  ;;  %p1276_p3 = scmp.lt.s32.totalorder %s1670_s20, %s1274_s9 }
  0x7b   : > { %981 = vmatprep.subr.bf16.mxu0 %v1145_v4  ;;  %1043 = vmatprep.subr.bf16.mxu1 %v1145_v4  ;;  %v1157_v18 = vld [vmem:[%s1599_s22] ss:$8 sps:$4 sm:$0xff]   ;;  %v1165_v21 = vld [vmem:[%s1599_s22 + $0x54] ss:$8 sps:$4 sm:$0xff]   ;;  %v1168_v23 = vld [vmem:[%s1599_s22 + $0x50] ss:$8 sps:$4 sm:$0xff]   ;;  %p1272_p0 = pneg %p1271_p12  ;;  %p1277_p4 = scmp.lt.s32.totalorder %s1275_s30, %s1269_s27 }
  0x7c   : > { %575 = vmatprep.mubr.bf16.mxu1 %v1162_v12  ;;  %v1160_v19 = vld [vmem:[%s1599_s22 + $0x40] ss:$8 sps:$4 sm:$0xff]   ;;  %v1169_v24 = vld [vmem:[%s1599_s22 + $0x24] ss:$8 sps:$4 sm:$0xff]   ;;  %v1175_v28 = vld [vmem:[%s1599_s22 + $0x34] ss:$8 sps:$4 sm:$0xff]  }
  0x7d   : > { %v1171_v25 = vld [vmem:[%s1599_s22 + $0x64] ss:$8 sps:$4 sm:$0xff]   ;;  %v1173_v26 = vld [vmem:[%s1599_s22 + $0x20] ss:$8 sps:$4 sm:$0xff]   ;;  %v1177_v29 = vld [vmem:[%s1599_s22 + $0x74] ss:$8 sps:$4 sm:$0xff]   ;;  %p1278_p5 = por %p1277_p4, %p1276_p3 }
  0x7e   : > { %982 = vmatpush3.bf16.msra.mxu0 %v1146_v5  ;;  %1051 = vmatpush3.bf16.msra.mxu1 %v1146_v5  ;;  %v1174_v27 = vld [vmem:[%s1599_s22 + $0x60] ss:$8 sps:$4 sm:$0xff]   ;;  %v1179_v30 = vld [vmem:[%s1599_s22 + $0x30] ss:$8 sps:$4 sm:$0xff]  }
  0x7f   : > { %983 = vmatprep.subr.bf16.mxu0 %v1147_v6  ;;  %1044 = vmatprep.subr.bf16.mxu1 %v1147_v6  ;;  %v1180_v31 = vld [vmem:[%s1599_s22 + $0x70] ss:$8 sps:$4 sm:$0xff]   ;;  %v715_v32 = vld [vmem:[%s1610_s4] sm:$0xff]  ;;  %v716_v36 = vld [vmem:[%s1610_s4 + $0x8] sm:$0xff]  ;;  %p1279_p11 = pnand %p1278_p5, %p1272_p0 }
  0x80   : > { %v723_v33 = vld [vmem:[%s1610_s4 + $0x40] sm:$0xff]  ;;  %v724_v37 = vld [vmem:[%s1610_s4 + $0x48] sm:$0xff]  ;;  %v731_v41 = vmul.f32 0.1, %v715_v32  ;;  %v732_v47 = vmul.f32 0.1, %v716_v36 }
  0x81   : > { %v739_v43 = vmul.f32 0.1, %v723_v33  ;;  %v740_v49 = vmul.f32 0.1, %v724_v37  ;;  %v717_v58 = vld [vmem:[%s1610_s4 + $0x10] sm:$0xff]  ;;  %v718_v0 = vld [vmem:[%s1610_s4 + $0x18] sm:$0xff] }
  0x82   : > { %984 = vmatpush3.bf16.msra.mxu0 %v1148_v7  ;;  %1052 = vmatpush3.bf16.msra.mxu1 %v1148_v7  ;;  %v725_v59 = vld [vmem:[%s1610_s4 + $0x50] sm:$0xff]  ;;  %v726_v1 = vld [vmem:[%s1610_s4 + $0x58] sm:$0xff]  ;;  %v733_v5 = vmul.f32 0.1, %v717_v58  ;;  %v734_v11 = vmul.f32 0.1, %v718_v0 }
  0x83   : > { %985 = vmatprep.subr.bf16.mxu0 %v1149_v8  ;;  %1045 = vmatprep.subr.bf16.mxu1 %v1149_v8  ;;  %v741_v7 = vmul.f32 0.1, %v725_v59 }
  0x86   : > { %986 = vmatpush3.bf16.msra.mxu0 %v1150_v9  ;;  %1053 = vmatpush3.bf16.msra.mxu1 %v1150_v9 }
  0x87   : > { %987 = vmatprep.subr.bf16.mxu0 %v1151_v10  ;;  %1046 = vmatprep.subr.bf16.mxu1 %v1151_v10 }
  0x8a   : > { %988 = vmatpush3.bf16.msra.mxu0 %v1152_v13  ;;  %1054 = vmatpush3.bf16.msra.mxu1 %v1152_v13  ;;  %v742_v13 = vmul.f32 0.1, %v726_v1 }
  0x8b   : > { %989 = vmatprep.subr.bf16.mxu0 %v1153_v14  ;;  %1047 = vmatprep.subr.bf16.mxu1 %v1153_v14 }
  0x8e   : > { %990 = vmatpush3.bf16.msra.mxu0 %v1154_v15  ;;  %1055 = vmatpush3.bf16.msra.mxu1 %v1154_v15 }
  0x8f   : > { %991 = vmatprep.subr.bf16.mxu0 %v1155_v16  ;;  %1048 = vmatprep.subr.bf16.mxu1 %v1155_v16 }
  0x92   : > { %992 = vmatpush3.bf16.msra.mxu0 %v1156_v17  ;;  %1056 = vmatpush3.bf16.msra.mxu1 %v1156_v17 }
  0x95   : > { %544 = vmatmul.mubr.bf16.vlgmr.msra.gmra.mrb[0].mxu0 %v1157_v18  ;;  %576 = vmatmul.mubr.bf16.vlgmr.msra.gmra.mrb[0].mxu1 %v1160_v19 }
  0x96   : > { %551 = vmatprep.mubr.bf16.mxu0 %v1163_v20  ;;  %583 = vmatprep.mubr.bf16.mxu1 %v1165_v21 }
  0x9d   : > { %552 = vmatmul.mubr.bf16.gmra.mrb[4].mxu0 %v1167_v22  ;;  %584 = vmatmul.mubr.bf16.gmra.mrb[4].mxu1 %v1168_v23  ;;  %v719_v22 = vld [vmem:[%s1610_s4 + $0x20] sm:$0xff] }
  0x9e   : > { %559 = vmatprep.mubr.bf16.mxu0 %v1169_v24  ;;  %591 = vmatprep.mubr.bf16.mxu1 %v1171_v25  ;;  %v727_v23 = vld [vmem:[%s1610_s4 + $0x60] sm:$0xff]  ;;  %v735_v33 = vmul.f32 0.1, %v719_v22 }
  0xa5   : > { %560 = vmatmul.mubr.bf16.gmra.mrb[8].mxu0 %v1173_v26  ;;  %592 = vmatmul.mubr.bf16.gmra.mrb[8].mxu1 %v1174_v27 }
  0xa6   : > { %567 = vmatprep.mubr.bf16.mxu0 %v1175_v28  ;;  %599 = vmatprep.mubr.bf16.mxu1 %v1177_v29  ;;  %v720_v28 = vld [vmem:[%s1610_s4 + $0x28] sm:$0xff] }
  0xa7   : > { %v728_v29 = vld [vmem:[%s1610_s4 + $0x68] sm:$0xff] }
  0xad   : > { %568 = vmatmul.mubr.bf16.gmra.mrb[12].mxu0 %v1179_v30  ;;  %600 = vmatmul.mubr.bf16.gmra.mrb[12].mxu1 %v1180_v31 }
 0x168   : > { %v993_v34 = vpop.f32.mrb[0].mxu0  ;;  %v1017_v35 = vpop.f32.mrb[0].mxu1 }
 0x169   : > { %v994_v38 = vpop.f32.mrb[1].mxu0  ;;  %v1018_v39 = vpop.f32.mrb[1].mxu1 }
 0x16a   : > { %v995_v40 = vadd.f32 %v994_v38, %v993_v34  ;;  %v1019_v42 = vadd.f32 %v1018_v39, %v1017_v35  ;;  %v996_v44 = vpop.f32.mrb[2].mxu0  ;;  %v1020_v45 = vpop.f32.mrb[2].mxu1  ;;  %v743_v35 = vmul.f32 0.1, %v727_v23  ;;  %v736_v39 = vmul.f32 0.1, %v720_v28 }
 0x16b   : > { %v997_v46 = vpop.f32.mrb[3].mxu0  ;;  %v1021_v48 = vpop.f32.mrb[3].mxu1 }
 0x16c   : > { %v699_v50 = vmul.f32 0.9, %v995_v40  ;;  %v707_v51 = vmul.f32 0.9, %v1019_v42  ;;  %v998_v52 = vadd.f32 %v997_v46, %v996_v44  ;;  %v1022_v53 = vadd.f32 %v1021_v48, %v1020_v45 }
 0x16e   : > { %v747_v54 = vadd.f32 %v731_v41, %v699_v50  ;;  %v755_v55 = vadd.f32 %v739_v43, %v707_v51  ;;  %v700_v56 = vmul.f32 0.9, %v998_v52  ;;  %v708_v57 = vmul.f32 0.9, %v1022_v53  ;;  %v721_v50 = vld [vmem:[%s1610_s4 + $0x30] sm:$0xff] }
 0x16f   : > { %v744_v41 = vmul.f32 0.1, %v728_v29  ;;  %v729_v51 = vld [vmem:[%s1610_s4 + $0x70] sm:$0xff] }
 0x170   : > { %763 = vst [vmem:[%s1639_s10] sm:$0xff] %v747_v54  ;;  %771 = vst [vmem:[%s1639_s10 + $0x40] sm:$0xff] %v755_v55  ;;  %v748_v60 = vadd.f32 %v732_v47, %v700_v56  ;;  %v756_v61 = vadd.f32 %v740_v49, %v708_v57  ;;  %v999_v62 = vpop.f32.mrb[4].mxu0  ;;  %v1023_v63 = vpop.f32.mrb[4].mxu1  ;;  %v722_v56 = vld [vmem:[%s1610_s4 + $0x38] sm:$0xff] }
 0x171   : > { %v1000_v2 = vpop.f32.mrb[5].mxu0  ;;  %v1024_v3 = vpop.f32.mrb[5].mxu1  ;;  %v730_v57 = vld [vmem:[%s1610_s4 + $0x78] sm:$0xff] }
 0x172   : > { %764 = vst [vmem:[%s1639_s10 + $0x8] sm:$0xff] %v748_v60  ;;  %772 = vst [vmem:[%s1639_s10 + $0x48] sm:$0xff] %v756_v61  ;;  %v1001_v4 = vadd.f32 %v1000_v2, %v999_v62  ;;  %v1025_v6 = vadd.f32 %v1024_v3, %v1023_v63  ;;  %v1002_v8 = vpop.f32.mrb[6].mxu0  ;;  %v1026_v9 = vpop.f32.mrb[6].mxu1  ;;  %v737_v61 = vmul.f32 0.1, %v721_v50 }
 0x173   : > { %v1003_v10 = vpop.f32.mrb[7].mxu0  ;;  %v1027_v12 = vpop.f32.mrb[7].mxu1  ;;  %v745_v63 = vmul.f32 0.1, %v729_v51  ;;  %v738_v3 = vmul.f32 0.1, %v722_v56 }
 0x174   : > { %v701_v14 = vmul.f32 0.9, %v1001_v4  ;;  %v709_v15 = vmul.f32 0.9, %v1025_v6  ;;  %v1004_v16 = vadd.f32 %v1003_v10, %v1002_v8  ;;  %v1028_v17 = vadd.f32 %v1027_v12, %v1026_v9 }
 0x176   : > { %v749_v18 = vadd.f32 %v733_v5, %v701_v14  ;;  %v757_v19 = vadd.f32 %v741_v7, %v709_v15  ;;  %v702_v20 = vmul.f32 0.9, %v1004_v16  ;;  %v710_v21 = vmul.f32 0.9, %v1028_v17 }
 0x177   : > { %v746_v5 = vmul.f32 0.1, %v730_v57 }
 0x178   : > { %765 = vst [vmem:[%s1639_s10 + $0x10] sm:$0xff] %v749_v18  ;;  %773 = vst [vmem:[%s1639_s10 + $0x50] sm:$0xff] %v757_v19  ;;  %v750_v24 = vadd.f32 %v734_v11, %v702_v20  ;;  %v758_v25 = vadd.f32 %v742_v13, %v710_v21  ;;  %v1005_v26 = vpop.f32.mrb[8].mxu0  ;;  %v1029_v27 = vpop.f32.mrb[8].mxu1 }
 0x179   : > { %v1006_v30 = vpop.f32.mrb[9].mxu0  ;;  %v1030_v31 = vpop.f32.mrb[9].mxu1 }
 0x17a   : > { %766 = vst [vmem:[%s1639_s10 + $0x18] sm:$0xff] %v750_v24  ;;  %774 = vst [vmem:[%s1639_s10 + $0x58] sm:$0xff] %v758_v25  ;;  %v1007_v32 = vadd.f32 %v1006_v30, %v1005_v26  ;;  %v1031_v34 = vadd.f32 %v1030_v31, %v1029_v27  ;;  %v1008_v36 = vpop.f32.mrb[10].mxu0  ;;  %v1032_v37 = vpop.f32.mrb[10].mxu1 }
 0x17b   : > { %v1009_v38 = vpop.f32.mrb[11].mxu0  ;;  %v1033_v40 = vpop.f32.mrb[11].mxu1 }
 0x17c   : > { %v703_v42 = vmul.f32 0.9, %v1007_v32  ;;  %v711_v43 = vmul.f32 0.9, %v1031_v34  ;;  %v1010_v44 = vadd.f32 %v1009_v38, %v1008_v36  ;;  %v1034_v45 = vadd.f32 %v1033_v40, %v1032_v37 }
 0x17e   : > { %v751_v46 = vadd.f32 %v735_v33, %v703_v42  ;;  %v759_v47 = vadd.f32 %v743_v35, %v711_v43  ;;  %v704_v48 = vmul.f32 0.9, %v1010_v44  ;;  %v712_v49 = vmul.f32 0.9, %v1034_v45 }
 0x180   : > { %767 = vst [vmem:[%s1639_s10 + $0x20] sm:$0xff] %v751_v46  ;;  %775 = vst [vmem:[%s1639_s10 + $0x60] sm:$0xff] %v759_v47  ;;  %v752_v52 = vadd.f32 %v736_v39, %v704_v48  ;;  %v760_v53 = vadd.f32 %v744_v41, %v712_v49  ;;  %v1011_v54 = vpop.f32.mrb[12].mxu0  ;;  %v1035_v55 = vpop.f32.mrb[12].mxu1 }
 0x181   : > { %v1012_v58 = vpop.f32.mrb[13].mxu0  ;;  %v1036_v59 = vpop.f32.mrb[13].mxu1 }
 0x182   : > { %768 = vst [vmem:[%s1639_s10 + $0x28] sm:$0xff] %v752_v52  ;;  %776 = vst [vmem:[%s1639_s10 + $0x68] sm:$0xff] %v760_v53  ;;  %v1013_v60 = vadd.f32 %v1012_v58, %v1011_v54  ;;  %v1037_v62 = vadd.f32 %v1036_v59, %v1035_v55  ;;  %v1014_v0 = vpop.f32.mrb[14].mxu0  ;;  %v1038_v1 = vpop.f32.mrb[14].mxu1 }
 0x183   : > { %v1015_v2 = vpop.f32.mrb[15].mxu0  ;;  %v1039_v4 = vpop.f32.mrb[15].mxu1 }
 0x184   : > { %v705_v6 = vmul.f32 0.9, %v1013_v60  ;;  %v713_v7 = vmul.f32 0.9, %v1037_v62  ;;  %v1016_v8 = vadd.f32 %v1015_v2, %v1014_v0  ;;  %v1040_v9 = vadd.f32 %v1039_v4, %v1038_v1 }
 0x186   : > { %v753_v10 = vadd.f32 %v737_v61, %v705_v6  ;;  %v761_v11 = vadd.f32 %v745_v63, %v713_v7  ;;  %v706_v12 = vmul.f32 0.9, %v1016_v8  ;;  %v714_v13 = vmul.f32 0.9, %v1040_v9 }
 0x188   : > { %769 = vst [vmem:[%s1639_s10 + $0x30] sm:$0xff] %v753_v10  ;;  %777 = vst [vmem:[%s1639_s10 + $0x70] sm:$0xff] %v761_v11  ;;  %v754_v14 = vadd.f32 %v738_v3, %v706_v12  ;;  %v762_v15 = vadd.f32 %v746_v5, %v714_v13 }
 0x18a   : > { %770 = vst [vmem:[%s1639_s10 + $0x38] sm:$0xff] %v754_v14  ;;  %778 = vst [vmem:[%s1639_s10 + $0x78] sm:$0xff] %v762_v15 }
 0x18b   : > { %1282 = shalt.err (!%p1279_p11)
}
 0x18c   : > { %s1283_s8 = scalar_lea.hbm %s1668_s26, 2048  ;;  %s1287_s29 = scalar_lea.hbm %s1728_s3, 4096 }
 0x18d   : > { %p1284_p9 = scmp.ne.s32.totalorder %s1668_s26, %s1283_s8  ;;  %p1288_p13 = scmp.lt.u32.totalorder %s1668_s26, %s1728_s3 }
 0x18e   : > { %p1289_p10 = scmp.lt.u32.totalorder %s1287_s29, %s1283_s8  ;;  %p1291_p2 = scmp.lt.u32.totalorder %s1283_s8, %s1668_s26 }
 0x18f   : > { %p1285_p8 = pnand %p1284_p9, %p1745_p7 }
 0x190   : > { %p1290_p1 = por %p1289_p10, %p1288_p13 }
 0x191   : > { %p1286_p6 = pneg %p1285_p8 }
 0x192   : > { %p1292_p12 = por %p1291_p2, %p1290_p1 }
 0x194   : > { %p1293_p0 = pnand %p1292_p12, %p1286_p6 }
 0x196   : > { %1296 = shalt.err (!%p1293_p0)
}
 0x197   : > { %s1369_s4 = smov 128   ;;  %s1370_s10 = smov 8  }
 0x198   : > { %1065 = dma.vmem_to_hbm [thread:$0]  (%p1745_p7), %s1670_s20, 2048, %s1668_s26, %s1678_s15, %s1369_s4, %s1369_s4, %s1370_s10  }
 0x199 PF: > { %s809_s23 = sand.u32 1, %s1339_s12   ;;  %p1746_p3 = scmp.ne.s32.totalorder %s1736_s28, 0 }
 0x19a   : > { %p1747_p4 = scmp.ge.s32.totalorder %s1359_s17, 2  ;;  %s810_s21 = scalar_lea.sflag [#allocation4], %s809_s23 }
 0x19c   : > { %p1079_p5 = pnand %p1747_p4, %p1746_p3 }
 0x19e   : > { %1334 = dma.done.wait (!%p1079_p5), %s810_s21, 2048  }
 0x19f   : > { %1336 = vsyncadd (!%p1079_p5), %s810_s21, 4294965248  ;;  %s20_s17 = sadd.s32 1, %s1359_s17   ;;  %s1748_s12 = smov %s1343_s13 }
 0x1a0   : > { %p17_p11 = scmp.ge.s32.totalorder %s20_s17, 4   ;;  %s1749_s13 = smov %s1347_s14 }
 0x1a1   : > { %s1750_s14 = smov %s1439_s24  ;;  %s1751_s15 = smov %s1355_s16 }
 0x1a2   : > { %s1752_s16 = smov %s1754_s18  ;;  %19 = sbr.rel (!%p17_p11) target bundleno = 7 (0x7), region = 106 }
 0x1a9   :  { %815 = vsyncpa [#allocation3], 1 }
 0x1aa   :  { %817 = vsyncpa [#allocation3 + $0x1], 1 }
 0x1ab   :  { %818 = vsyncpa [#allocation6], 1 }
 0x1ac   :  { %819 = vsyncpa [#allocation4], 1 }
 0x1ad   :  { %821 = vsyncpa [#allocation4 + $0x1], 1 }

</bundles_post_ra>
